<compile_context>
chip_gen: v5e
topology: v5e:2x2
jax: 0.10.0
libtpu: 0.0.40
codegen_flags: <defaults>
</compile_context>

<pallas_src>
import jax
import jax.numpy as jnp
from jax.experimental import pallas as pl
from jax.experimental.pallas import tpu as pltpu

QMIN, QMAX = -128, 127        # qint8 output range
LANES = 128                   # TPU lane width
TM_MAX = 16384                # rows per block -> 2 MiB int8 per buffer
MIN_STEPS = 4                 # aim for at least this many grid steps
X_MIN, X_MAX = -20.0, 20.0    # MultiTableFit domain (left/right line limits)
Q_HI_MARGIN = 127.49          # round(x) <= 127 for any x <= this (with fp slack)


def _make_exp_quant_kernel(use_bf16_exp):
    def kernel(params_ref, x_ref, o_ref):
        # params (SMEM, f32[4]): [scale_in, 1/scale_out, lo, hi]
        s_in = params_ref[0]
        inv_s_out = params_ref[1]
        lo = params_ref[2]
        hi = params_ref[3]

        # dequantize + single folded clip (domain saturation AND output clamp)
        t = jnp.clip(x_ref[...].astype(jnp.float32) * s_in, lo, hi)
        if use_bf16_exp:
            # v6e/v7x: bf16 EUP exp runs ~2x the f32 rate; widen for requant.
            y = jnp.exp(t.astype(jnp.bfloat16)).astype(jnp.float32)
        else:
            y = jnp.exp(t)
        # exp(t) > 0  ->  q >= 0 > -128 ;  t <= ln(127.49*scale_out) -> q <= 127,
        # so no int8 output clamps are needed before the cast.
        o_ref[...] = jnp.round(y * inv_s_out).astype(jnp.int8)

    return kernel


_EXP_KERNEL_F32 = _make_exp_quant_kernel(use_bf16_exp=False)
_EXP_KERNEL_BF16 = _make_exp_quant_kernel(use_bf16_exp=True)


def _choose_tm(rows):
    """Rows-per-block: multiple of 32 (int8 packing), grid-aware, <= TM_MAX."""
    if rows <= 32:
        # Single block equal to the full array (allowed for any row count).
        return rows
    tm = ((pl.cdiv(rows, MIN_STEPS) + 31) // 32) * 32
    tm = max(32, min(tm, TM_MAX))
    steps = pl.cdiv(rows, tm)
    if steps > 1 and steps % 2 == 1:
        # Prefer an even step count so both v7x TensorCores get equal work.
        tm_alt = max(32, ((pl.cdiv(rows, steps + 1) + 31) // 32) * 32)
        if pl.cdiv(rows, tm_alt) % 2 == 0:
            tm = tm_alt
    return tm


def quantized_exp(x_q, scale_in, scale_out, *, use_bf16_exp=False):
    """x_q: int8 tensor (any shape); scale_in/scale_out: scalar float32.

    Returns an int8 tensor (same shape) quantized with scale_out, matching
    clamp(round(exp(clip(x_q*scale_in, -20, 20)) / scale_out), -128, 127).
    """
    orig_shape = x_q.shape
    total = int(x_q.size)
    flat = x_q.reshape(-1)

    # Lane-dense (rows, 128) layout.  Only pad when the element count is not a
    # multiple of 128 (rare); padding to a block multiple is never needed
    # because Pallas masks the partial last block.
    pad = (-total) % LANES
    if pad:
        # TODO(synk): unaligned-shape path costs one extra HBM copy (jnp.pad).
        flat = jnp.pad(flat, (0, pad))
    rows = (total + pad) // LANES
    x2d = flat.reshape(rows, LANES)

    tm = _choose_tm(rows)
    grid = (pl.cdiv(rows, tm),)

    # Scalar prep (hoisted out of the kernel).
    s_in = jnp.asarray(scale_in, jnp.float32)
    s_out = jnp.asarray(scale_out, jnp.float32)
    inv_s_out = jnp.float32(1.0) / s_out
    # hi: argument bound that guarantees q <= 127; also saturate at the table
    # domain edge.  lo <= hi always (degenerate tiny-scale case collapses to hi,
    # which reproduces the reference's all-127 output).
    hi = jnp.minimum(jnp.log(jnp.float32(Q_HI_MARGIN) * s_out), jnp.float32(X_MAX))
    lo = jnp.minimum(jnp.float32(X_MIN), hi)
    params = jnp.stack([s_in, inv_s_out, lo, hi]).astype(jnp.float32)

    kernel = _EXP_KERNEL_BF16 if use_bf16_exp else _EXP_KERNEL_F32

    out2d = pl.pallas_call(
        kernel,
        out_shape=jax.ShapeDtypeStruct((rows, LANES), jnp.int8),
        grid_spec=pltpu.PrefetchScalarGridSpec(
            num_scalar_prefetch=0,
            grid=grid,
            in_specs=[
                pl.BlockSpec(memory_space=pltpu.MemorySpace.SMEM),  # params[4]
                pl.BlockSpec((tm, LANES), lambda i: (i, 0)),        # x tile
            ],
            out_specs=pl.BlockSpec((tm, LANES), lambda i: (i, 0)),
        ),
        compiler_params=pltpu.CompilerParams(
            dimension_semantics=("parallel",)),
        cost_estimate=pl.CostEstimate(
            flops=5 * rows * LANES,
            transcendentals=rows * LANES,
            bytes_accessed=2 * rows * LANES + 16),
    )(params, x2d)

    out_flat = out2d.reshape(-1)
    if pad:
        out_flat = out_flat[:total]
    return out_flat.reshape(orig_shape)


def reference_exp(x_q, scale_in, scale_out):
    x = jnp.clip(x_q.astype(jnp.float32) * scale_in, X_MIN, X_MAX)
    y = jnp.exp(x)
    q = jnp.clip(jnp.round(y / scale_out), QMIN, QMAX)
    return q.astype(jnp.int8)


def _check(x_q, scale_in, scale_out):
    out = jax.block_until_ready(quantized_exp(x_q, scale_in, scale_out))
    ref = reference_exp(x_q, scale_in, scale_out)
    assert out.shape == x_q.shape and out.dtype == jnp.int8
    # round-half boundaries with the hoisted 1/scale_out multiply may differ
    # from the reference divide by at most 1 LSB.
    assert jnp.max(jnp.abs(out.astype(jnp.int32) - ref.astype(jnp.int32))) <= 1


if __name__ == "__main__":
    key = jax.random.PRNGKey(0)
    k0, k1, k2 = jax.random.split(key, 3)

    # Deterministic "buffer" initialization (module registers `scale` buffer).
    scale_in = jnp.float32(0.05)    # input quantization scale
    scale_out = jnp.float32(0.02)   # self.scale buffer of the quantized Exp

    # Small NCHW activation consistent with the quantized Exp module.
    x_small = jax.random.randint(k0, (2, 4, 16, 16), QMIN, QMAX + 1,
                                 dtype=jnp.int32).astype(jnp.int8)
    _check(x_small, scale_in, scale_out)

    # Larger tensor exercising the multi-step streaming grid (4 full blocks).
    x_big = jax.random.randint(k1, (8, 8, 32, 32), QMIN, QMAX + 1,
                               dtype=jnp.int32).astype(jnp.int8)
    _check(x_big, scale_in, scale_out)

    # Unaligned element count exercising the (rare) pad/slice path.
    x_odd = jax.random.randint(k2, (2, 3, 5, 7), QMIN, QMAX + 1,
                               dtype=jnp.int32).astype(jnp.int8)
    _check(x_odd, scale_in, scale_out)

    print("KERNEL_OK")
</pallas_src>

<mosaic_0001>
module attributes {stable_mosaic.version = 11 : i64} {
  func.func @kernel(%arg0: i32, %arg1: memref<4xf32, #tpu.memory_space<smem>>, %arg2: memref<16x128xi8, #tpu.memory_space<vmem>>, %arg3: memref<16x128xi8, #tpu.memory_space<vmem>>) attributes {dimension_semantics = [#tpu.dimension_semantics<parallel>], iteration_bounds = array<i64: 1>, scalar_prefetch = 0 : i64, scratch_operands = 0 : i64, tpu.core_type = #tpu.core_type<tc>, window_params = [{transform_indices = @transform_0, window_bounds = array<i64: 4>}, {transform_indices = @transform_1, window_bounds = array<i64: 16, 128>}, {transform_indices = @transform_2, window_bounds = array<i64: 16, 128>}]} {
    %c0 = arith.constant 0 : index
    %0 = memref.load %arg1[%c0] : memref<4xf32, #tpu.memory_space<smem>>
    %c1 = arith.constant 1 : index
    %1 = memref.load %arg1[%c1] : memref<4xf32, #tpu.memory_space<smem>>
    %c2 = arith.constant 2 : index
    %2 = memref.load %arg1[%c2] : memref<4xf32, #tpu.memory_space<smem>>
    %c3 = arith.constant 3 : index
    %3 = memref.load %arg1[%c3] : memref<4xf32, #tpu.memory_space<smem>>
    %c0_0 = arith.constant 0 : index
    %c0_1 = arith.constant 0 : index
    %4 = vector.load %arg2[%c0_0, %c0_1] : memref<16x128xi8, #tpu.memory_space<vmem>>, vector<16x128xi8>
    %5 = arith.sitofp %4 : vector<16x128xi8> to vector<16x128xf32>
    %6 = vector.broadcast %0 : f32 to vector<16x128xf32>
    %7 = arith.mulf %5, %6 : vector<16x128xf32>
    %8 = vector.broadcast %2 : f32 to vector<16x128xf32>
    %9 = arith.maximumf %8, %7 : vector<16x128xf32>
    %10 = vector.broadcast %3 : f32 to vector<16x128xf32>
    %11 = arith.minimumf %10, %9 : vector<16x128xf32>
    %12 = math.exp %11 : vector<16x128xf32>
    %13 = vector.broadcast %1 : f32 to vector<16x128xf32>
    %14 = arith.mulf %12, %13 : vector<16x128xf32>
    %15 = math.roundeven %14 : vector<16x128xf32>
    %16 = arith.fptosi %15 : vector<16x128xf32> to vector<16x128xi8>
    %c0_2 = arith.constant 0 : index
    %c0_3 = arith.constant 0 : index
    %17 = vector.load %arg3[%c0_2, %c0_3] : memref<16x128xi8, #tpu.memory_space<vmem>>, vector<16x128xi8>
    tpu.vector_store %arg3[%c0_2, %c0_3], %16 {strides = array<i32>} : memref<16x128xi8, #tpu.memory_space<vmem>>, vector<16x128xi8>,
    return
  }
  func.func @transform_0(%arg0: i32) -> i32 {
    %c0_i32 = arith.constant 0 : i32
    %c0_i32_0 = arith.constant 0 : i32
    return %c0_i32 : i32
  }
  func.func @transform_1(%arg0: i32) -> (i32, i32) {
    %c0_i32 = arith.constant 0 : i32
    %c0_i32_0 = arith.constant 0 : i32
    return %arg0, %c0_i32 : i32, i32
  }
  func.func @transform_2(%arg0: i32) -> (i32, i32) {
    %c0_i32 = arith.constant 0 : i32
    %c0_i32_0 = arith.constant 0 : i32
    return %arg0, %c0_i32 : i32, i32
  }
}

</mosaic_0001>

<bundles_post_ra>
// kernel: tpu_custom_call.1
= control target key start
LH: loop header
LB: loop body
LE: loop exit
PB: predicated region body
PF: predicated region fallthrough
CT: control target
= control target key end

     0   :  { %7 = vsyncpa [#allocation5], 0  ;;  %s230_s0 = inlined_call_operand.hbm [shape: f32[4], index: 0, kind: input, shape index: {}]   ;;  %s231_s1 = inlined_call_operand.hbm [shape: s8[16,128], index: 1, kind: input, shape index: {}]   ;;  %s232_s2 = inlined_call_operand.hbm [shape: s8[16,128], index: 2, kind: output, shape index: {}]  }
   0x1   :  { %8 = vsyncpa [#allocation3], 0 }
   0x2   :  { %9 = vsyncpa [#allocation4], 0  ;;  %s15_s11 = sshll.u32 %s230_s0, 4  ;;  %s23_s14 = sshll.u32 %s231_s1, 4  ;;  %s16_s11 = int_to_ptr.hbm [resolvable:$true] %s15_s11  ;;  %s24_s14 = int_to_ptr.hbm [resolvable:$true] %s23_s14 }
   0x3   :  { %s195_s15 = smov [#allocation2]   ;;  %s196_s16 = smov [#allocation6]  }
   0x4   :  { %18 = dma.hbm_to_smem %s16_s11, 16, %s195_s15, [#allocation5]  }
   0x5   :  { %s25_s17 = sshll.u32 %s196_s16, 4  ;;  %s197_s18 = smov 32   ;;  %s26_s17 = int_to_ptr.vmem [resolvable:$true] %s25_s17 }
   0x6   :  { %s198_s19 = smov 2  }
   0x7   :  { %31 = dma.hbm_to_vmem [thread:$0]  %s24_s14, 64, %s26_s17, [#allocation3], %s197_s18, %s197_s18, %s198_s19  }
   0x8   :  { %189 = dma.done.wait [#allocation5], 16  }
   0x9   :  { %190 = vsyncadd [#allocation5], 4294967280 }
   0xa   :  { %191 = dma.done.wait [#allocation3], 64  }
   0xb   :  { %192 = vsyncadd [#allocation3], 4294967232 }
   0xc   :  { %40 = sfence }
   0xd   :  { %s41_s0 = sld [smem:[#allocation2]]  ;;  %v111_v0 = vld [vmem:[#allocation6] sm:$0xf]   ;;  %s199_s22 = smov [#allocation7]  }
   0xe   :  { %v112_v1 = vunpack.c.0.s8 %v111_v0  ;;  %v113_v2 = vunpack.c.1.s8 %v111_v0  ;;  %s102_s1 = sld [smem:[#allocation2 + $0x2]]  ;;  %s85_s23 = sshll.u32 %s199_s22, 4  ;;  %s86_s23 = int_to_ptr.vmem [resolvable:$true] %s85_s23 }
   0xf   :  { %s103_s20 = sld [smem:[#allocation2 + $0x3]]  ;;  %s87_s26 = sshll.u32 %s232_s2, 4  ;;  %s88_s26 = int_to_ptr.hbm [resolvable:$true] %s87_s26 }
  0x10   :  { %v49_v3 = vcvt.s32.f32 %v112_v1  ;;  %v50_v4 = vcvt.s32.f32 %v113_v2  ;;  %s101_s21 = sld [smem:[#allocation2 + $0x1]] }
  0x13   :  { %v51_v5 = vstv %s41_s0 }
  0x14   :  { %v52_v6 = vmul.f32 %v51_v5, %v49_v3  ;;  %v53_v7 = vmul.f32 %v51_v5, %v50_v4  ;;  %v54_v8 = vstv %s102_s1 }
  0x15   :  { %v57_v10 = vstv %s103_s20 }
  0x16   :  { %v55_v9 = vmax.f32 %v54_v8, %v52_v6  ;;  %v56_v11 = vmax.f32 %v54_v8, %v53_v7  ;;  %v64_v16 = vstv %s101_s21 }
  0x18   :  { %v58_v12 = vmin.f32 %v57_v10, %v55_v9  ;;  %v59_v13 = vmin.f32 %v57_v10, %v56_v11 }
  0x1a   :  { %v60_v14 = vmul.f32 1.442695, %v58_v12  ;;  %v62_v15 = vmul.f32 1.442695, %v59_v13 }
  0x1c   :  { %125 = vpow2.f32 %v60_v14 }
  0x1d   :  { %127 = vpow2.f32 %v62_v15 }
  0x22   :  { %v126_v17 = vpop.eup %125 }
  0x23   :  { %v128_v18 = vpop.eup %127  ;;  %v65_v19 = vmul.f32 %v126_v17, %v64_v16 }
  0x24   :  { %v66_v20 = vmul.f32 %v128_v18, %v64_v16 }
  0x25   :  { %v104_v21 = vmax.f32 %v65_v19, -128.0 }
  0x26   :  { %v107_v22 = vmax.f32 %v66_v20, -128.0 }
  0x27   :  { %v105_v23 = vmin.f32 %v104_v21, 127.0 }
  0x28   :  { %v108_v24 = vmin.f32 %v107_v22, 127.0 }
  0x29   :  { %v116_v25 = vcvt.f32.s32 %v105_v23 }
  0x2a   :  { %v119_v26 = vcvt.f32.s32 %v108_v24 }
  0x2b   :  { %v75_v27 = vpack.c.b16 %v116_v25, %v116_v25 }
  0x2c   :  { %v77_v28 = vpack.c.b16 %v119_v26, %v119_v26 }
  0x2d   :  { %v76_v29 = vpack.c.b8 %v75_v27, %v75_v27 }
  0x2e   :  { %v78_v30 = vpack.c.b8 %v77_v28, %v77_v28 }
  0x2f   :  { %79 = vst [vmem:[#allocation7] sm:$0x3] %v76_v29 }
  0x30   :  { %80 = vst [vmem:[#allocation7 + $0x2] sm:$0x3] %v78_v30 }
  0x31   :  { %93 = dma.vmem_to_hbm [thread:$0]  %s86_s23, 64, %s88_s26, [#allocation4], %s197_s18, %s197_s18, %s198_s19  }
  0x32   :  { %193 = dma.done.wait [#allocation4], 64  }
  0x33   :  { %194 = vsyncadd [#allocation4], 4294967232 }
  0x34   :  { %98 = vsyncpa [#allocation3], 1 }
  0x35   :  { %99 = vsyncpa [#allocation4], 1 }
  0x36   :  { %100 = vsyncpa [#allocation5], 1 }

</bundles_post_ra>
